<compile_context>
chip_gen: v6e
topology: v6e:2x2x1
jax: 0.10.0
libtpu: 0.0.40
codegen_flags: <defaults>
</compile_context>

<pallas_src>
import math

import jax
import jax.numpy as jnp
from jax.experimental import pallas as pl
from jax.experimental.pallas import tpu as pltpu


# ----------------------------------------------------------------------------
# Pallas kernel: pure pass-through of one lane-dense tile.
# ----------------------------------------------------------------------------
def _identity_copy_kernel(x_ref, o_ref):
    o_ref[...] = x_ref[...]


# ----------------------------------------------------------------------------
# Helpers
# ----------------------------------------------------------------------------
def _round_up(v: int, m: int) -> int:
    return ((v + m - 1) // m) * m


def _native_sublane(dtype) -> int:
    """Dtype-native sublane multiple: 8 (4-byte), 16 (2-byte), 32 (1-byte)."""
    itemsize = jnp.dtype(dtype).itemsize
    return {4: 8, 2: 16, 1: 32}.get(itemsize, 8)


def _vmem_capacity_bytes() -> int:
    """Generation-aware physical VMEM; conservative fallback = 64 MiB (v7x)."""
    try:
        return int(pltpu.get_tpu_info().vmem_capacity_bytes)
    except Exception:
        return 64 * 1024 * 1024


def _choose_2d_factorization(shape, dtype):
    """Pick (R, L) with R * L == prod(shape), preferring L % 128 == 0.

    Avoids jnp.pad / slicing entirely: when no 128 factor exists, the original
    trailing dim becomes the lane axis and blocks span it fully (legal per the
    full-dim rule); Pallas masks ragged edges itself.
    """
    total = math.prod(shape)
    native = _native_sublane(dtype)
    if total % 128 == 0:
        lanes = 128
        # Widen lanes while the factor exists, but keep enough rows for >=2
        # native-sublane row tiles (keeps the v7x parallel axis non-degenerate).
        while (total % (lanes * 2) == 0
               and lanes * 2 <= 8192
               and (total // (lanes * 2)) >= 2 * native):
            lanes *= 2
        return total // lanes, lanes
    lanes = shape[-1]
    return total // lanes, lanes


# ----------------------------------------------------------------------------
# Identity pass-through of an arbitrary-rank array via one Pallas copy.
# ----------------------------------------------------------------------------
def _pallas_identity_nd(x: jax.Array) -> jax.Array:
    orig_shape = x.shape
    dtype = x.dtype
    itemsize = jnp.dtype(dtype).itemsize
    native = _native_sublane(dtype)

    R, L = _choose_2d_factorization(orig_shape, dtype)
    x2d = x.reshape(R, L)

    # Row-tile from a byte budget (~8 MiB/tile), lane-dense full-L blocks.
    target_tile_bytes = 8 * 1024 * 1024
    row_bytes = max(L * itemsize, 1)
    tr = max(native, (target_tile_bytes // row_bytes) // native * native)
    tr = min(tr, _round_up(R, native))

    # v7x megacore: keep the "parallel" axis at >=2 grid steps when possible.
    if R >= 2 * native and pl.cdiv(R, tr) < 2:
        tr = max(native, _round_up(pl.cdiv(R, 2), native))

    grid = (pl.cdiv(R, tr),)

    # VMEM: in + out, double-buffered -> 4 live tiles; + scratch headroom.
    live_bytes = 4 * tr * L * itemsize
    vmem_limit = int(min(live_bytes + (8 << 20),
                         int(_vmem_capacity_bytes() * 0.9)))

    y2d = pl.pallas_call(
        _identity_copy_kernel,
        out_shape=jax.ShapeDtypeStruct((R, L), dtype),
        grid=grid,
        in_specs=[pl.BlockSpec((tr, L), lambda i: (i, 0))],
        out_specs=pl.BlockSpec((tr, L), lambda i: (i, 0)),
        compiler_params=pltpu.CompilerParams(
            dimension_semantics=("parallel",),
            vmem_limit_bytes=vmem_limit,
        ),
    )(x2d)

    return y2d.reshape(orig_shape)


# Always-jitted hot path (review: jit regardless of compile_model so eager
# dispatch never dominates for small latents; glue reshapes fuse away).
_jitted_pallas_identity = jax.jit(_pallas_identity_nd)


# ----------------------------------------------------------------------------
# Synthetic stand-in for the wrapped diffusion model.
# ----------------------------------------------------------------------------
def synthetic_diffusion_model(x, t=None, context=None, **kwargs):
    """IdentityWrapper makes no assumption about the wrapped model's internals;
    this stand-in passes x through a Pallas kernel unchanged so the wrapper's
    blind forwarding of (x, t, context, **kwargs) is exercised on TPU."""
    return _jitted_pallas_identity(x)


# ----------------------------------------------------------------------------
# JAX port of sgm IdentityWrapper: forwards everything to the model.
# ----------------------------------------------------------------------------
class IdentityWrapper:
    def __init__(self, diffusion_model, compile_model: bool = False):
        # torch.compile -> jax.jit analogue; identity wrap if compile_model=False
        # (the Pallas path above is already jitted either way).
        compile_fn = jax.jit if compile_model else (lambda f: f)
        self.diffusion_model = compile_fn(diffusion_model)

    def __call__(self, *args, **kwargs):
        return self.diffusion_model(*args, **kwargs)


if __name__ == "__main__":
    key = jax.random.PRNGKey(0)
    kx, kt, kc = jax.random.split(key, 3)

    # Small diffusion-UNet-style inputs: NCHW latents, timestep, context.
    x = jax.random.normal(kx, (2, 4, 16, 16), dtype=jnp.float32)
    t = jax.random.uniform(kt, (2,), dtype=jnp.float32)
    context = jax.random.normal(kc, (2, 8, 32), dtype=jnp.float32)

    wrapper = IdentityWrapper(synthetic_diffusion_model, compile_model=False)
    out = wrapper(x, t, context=context)
    out = jax.block_until_ready(out)

    assert out.shape == x.shape and out.dtype == x.dtype
    assert bool(jnp.allclose(out, x))
    print("KERNEL_OK")
</pallas_src>

<mosaic_0001>
module attributes {stable_mosaic.version = 11 : i64} {
  func.func @_identity_copy_kernel(%arg0: i32, %arg1: memref<8x128xf32, #tpu.memory_space<vmem>>, %arg2: memref<8x128xf32, #tpu.memory_space<vmem>>) attributes {dimension_semantics = [#tpu.dimension_semantics<parallel>], iteration_bounds = array<i64: 2>, scalar_prefetch = 0 : i64, scratch_operands = 0 : i64, tpu.core_type = #tpu.core_type<tc>, window_params = [{transform_indices = @transform_0, window_bounds = array<i64: 8, 128>}, {transform_indices = @transform_1, window_bounds = array<i64: 8, 128>}]} {
    %c0 = arith.constant 0 : index
    %c0_0 = arith.constant 0 : index
    %0 = vector.load %arg1[%c0, %c0_0] : memref<8x128xf32, #tpu.memory_space<vmem>>, vector<8x128xf32>
    %c0_1 = arith.constant 0 : index
    %c0_2 = arith.constant 0 : index
    %1 = vector.load %arg2[%c0_1, %c0_2] : memref<8x128xf32, #tpu.memory_space<vmem>>, vector<8x128xf32>
    tpu.vector_store %arg2[%c0_1, %c0_2], %0 {strides = array<i32>} : memref<8x128xf32, #tpu.memory_space<vmem>>, vector<8x128xf32>,
    return
  }
  func.func @transform_0(%arg0: i32) -> (i32, i32) {
    %c0_i32 = arith.constant 0 : i32
    %c0_i32_0 = arith.constant 0 : i32
    return %arg0, %c0_i32 : i32, i32
  }
  func.func @transform_1(%arg0: i32) -> (i32, i32) {
    %c0_i32 = arith.constant 0 : i32
    %c0_i32_0 = arith.constant 0 : i32
    return %arg0, %c0_i32 : i32, i32
  }
}

</mosaic_0001>

<bundles_post_ra>
// kernel: _pallas_identity_nd.1
= control target key start
LH: loop header
LB: loop body
LE: loop exit
PB: predicated region body
PF: predicated region fallthrough
CT: control target
= control target key end

     0   :  { %s188_s6 = smov 0   ;;  %s208_s0 = inlined_call_operand.vmem [shape: f32[16,128], index: 0, kind: input, shape index: {}]   ;;  %s209_s1 = inlined_call_operand.vmem [shape: f32[16,128], index: 1, kind: output, shape index: {}]  }
   0x1 LB: > { %s167_s7 = sadd.s32 4294967295, %s190_s6   ;;  %p171_p0 = scmp.ge.s32.totalorder %s190_s6, 1  ;;  %s190_s6 = sphi %s188_s6, %s11_s6  }
   0x2   : > { %p86_p1 = scmp.lt.s32.totalorder %s190_s6, 3 }
   0x4   : > { %p87_p2 = pnand %p171_p0, %p86_p1 }
   0x5   : > { %p104_p3 = scmp.lt.s32.totalorder (!%p87_p2), %s167_s7, 1 }
   0x6   : > { %90 = sbr.rel (%p87_p2) target bundleno = 16 (0x10), region = 24 }
   0xb   : > { %s211_s7 = smov (!%p104_p3, %s167_s7), 1 }
   0xc   : > { %s172_s8 = sshll.u32 %s211_s7, 3 }
   0xd   : > { %s107_s11 = scalar_lea.vmem %s208_s0, %s172_s8  ;;  %s111_s14 = scalar_lea.vmem %s209_s1, %s172_s8 }
   0xe   : > { %v112_v0 = vld [vmem:[%s107_s11] sm:$0xff] }
   0xf   : > { %113 = vst [vmem:[%s111_s14] sm:$0xff] %v112_v0 }
  0x10 PF: > { %s11_s6 = sadd.s32 1, %s190_s6  }
  0x11   : > { %p8_p4 = scmp.ge.s32.totalorder %s11_s6, 4  }
  0x13   :  { %10 = sbr.rel (!%p8_p4) target bundleno = 1 (0x1), region = 54 }

</bundles_post_ra>
